<compile_context>
chip_gen: v7x
topology: tpu7x:2x2x1
jax: 0.10.0
libtpu: 0.0.40
codegen_flags: <defaults>
</compile_context>

<pallas_src>
import functools

import jax
import jax.numpy as jnp
from jax.experimental import pallas as pl
from jax.experimental.pallas import tpu as pltpu

PMASK_SLOPE = 5.0


def _probmask_kernel(w_ref, o_ref, *, slope):
    # w_ref: (H, 1) float32 — one logit per Cartesian line (sublane axis).
    # o_ref: (1, H, W) output block for one (n, c) slice; W maps to lanes.
    h = o_ref.shape[1]
    w_lanes = o_ref.shape[2]

    # H scalar-ish EUP sigmoids per block — negligible next to the output DMA.
    vals = jax.nn.sigmoid(jnp.float32(slope) * w_ref[...].astype(jnp.float32))  # (H, 1)

    # Lane-axis broadcast (H, 1) -> (H, W); single wide store per block.
    tile = jnp.broadcast_to(vals, (h, w_lanes))
    o_ref[...] = tile[None, :, :].astype(o_ref.dtype)


def prob_mask_cartesian(x, weight, slope=PMASK_SLOPE):
    """x: (N, C, H, W); weight: (1, 1, H, 1).  Returns (N, C, H, W) = sigmoid(slope*weight) broadcast."""
    N, C, H, W = x.shape
    assert weight.shape == (1, 1, H, 1), "weight must be (1, 1, H, 1) with H == x.shape[2]"

    B = N * C
    w2d = weight.reshape(H, 1).astype(jnp.float32)
    out_dtype = x.dtype

    kernel = functools.partial(_probmask_kernel, slope=float(slope))

    out = pl.pallas_call(
        kernel,
        out_shape=jax.ShapeDtypeStruct((B, H, W), out_dtype),
        grid_spec=pltpu.PrefetchScalarGridSpec(
            num_scalar_prefetch=0,
            grid=(B,),
            # Weight column: same tiny (H, 1) block at every grid step.
            in_specs=[pl.BlockSpec((H, 1), lambda b: (0, 0))],
            # One (H, W) output slice per fused (n, c) index; last two dims
            # equal the full array dims, so the (8, 128) constraint is satisfied.
            out_specs=pl.BlockSpec((1, H, W), lambda b: (b, 0, 0)),
        ),
        compiler_params=pltpu.CompilerParams(
            dimension_semantics=("parallel",),
        ),
    )(w2d)

    return out.reshape(N, C, H, W)


def _reference(x, weight, slope):
    # Pure-JAX mirror of the PyTorch module's forward.
    mask = jnp.repeat(weight, repeats=x.shape[-1], axis=3)          # (1,1,H,W)
    logit_weights = 0.0 * x[..., 0:1] + mask                        # (N,C,H,W)
    return jax.nn.sigmoid(slope * logit_weights)


if __name__ == "__main__":
    key = jax.random.PRNGKey(0)
    k_w, k_x = jax.random.split(key)

    N, C, H, W = 2, 4, 16, 16
    slope = PMASK_SLOPE
    eps = 1e-4

    # Mirror ProbMask_Cartesian.reset_parameters(): uniform(eps, 1-eps) then logit/slope.
    w0 = jax.random.uniform(k_w, (1, 1, H, 1), dtype=jnp.float32, minval=eps, maxval=1.0 - eps)
    weight = -jnp.log(1.0 / w0 - 1.0) / slope

    x = jax.random.uniform(k_x, (N, C, H, W), dtype=jnp.float32)

    out = prob_mask_cartesian(x, weight, slope=slope)
    out = jax.block_until_ready(out)

    ref = _reference(x, weight, jnp.float32(slope))
    assert out.shape == x.shape and out.dtype == x.dtype
    max_err = float(jnp.max(jnp.abs(out - ref)))
    assert jnp.allclose(out, ref, atol=1e-6, rtol=1e-6), f"max abs err {max_err}"

    print("KERNEL_OK")
</pallas_src>

<mosaic_0001>
module attributes {stable_mosaic.version = 11 : i64} {
  func.func @_probmask_kernel(%arg0: i32, %arg1: memref<16x1xf32, #tpu.memory_space<vmem>>, %arg2: memref<1x16x16xf32, #tpu.memory_space<vmem>>) attributes {dimension_semantics = [#tpu.dimension_semantics<parallel>], iteration_bounds = array<i64: 8>, scalar_prefetch = 0 : i64, scratch_operands = 0 : i64, tpu.core_type = #tpu.core_type<tc>, window_params = [{pipeline_mode = #tpu.pipeline_mode<synchronous>, transform_indices = @transform_0, window_bounds = array<i64: 16, 1>}, {transform_indices = @transform_1, window_bounds = array<i64: 1, 16, 16>}]} {
    %c0 = arith.constant 0 : index
    %c0_0 = arith.constant 0 : index
    %0 = vector.load %arg1[%c0, %c0_0] : memref<16x1xf32, #tpu.memory_space<vmem>>, vector<16x1xf32>
    %cst = arith.constant 5.000000e+00 : f32
    %1 = vector.broadcast %cst : f32 to vector<16x1xf32>
    %2 = arith.mulf %1, %0 : vector<16x1xf32>
    %3 = arith.negf %2 : vector<16x1xf32>
    %4 = math.exp %3 : vector<16x1xf32>
    %cst_1 = arith.constant 1.000000e+00 : f32
    %5 = vector.broadcast %cst_1 : f32 to vector<16x1xf32>
    %6 = arith.addf %5, %4 : vector<16x1xf32>
    %7 = arith.divf %5, %6 : vector<16x1xf32>
    %8 = vector.shape_cast %7 : vector<16x1xf32> to vector<16x1xf32>
    %9 = vector.broadcast %8 : vector<16x1xf32> to vector<16x16xf32>
    %10 = vector.shape_cast %9 : vector<16x16xf32> to vector<1x16x16xf32>
    %c0_2 = arith.constant 0 : index
    %c0_3 = arith.constant 0 : index
    %c0_4 = arith.constant 0 : index
    %11 = vector.load %arg2[%c0_2, %c0_3, %c0_4] : memref<1x16x16xf32, #tpu.memory_space<vmem>>, vector<1x16x16xf32>
    tpu.vector_store %arg2[%c0_2, %c0_3, %c0_4], %10 {strides = array<i32>} : memref<1x16x16xf32, #tpu.memory_space<vmem>>, vector<1x16x16xf32>,
    return
  }
  func.func @transform_0(%arg0: i32) -> (i32, i32) {
    %c0_i32 = arith.constant 0 : i32
    %c0_i32_0 = arith.constant 0 : i32
    %c0_i32_1 = arith.constant 0 : i32
    return %c0_i32, %c0_i32_0 : i32, i32
  }
  func.func @transform_1(%arg0: i32) -> (i32, i32, i32) {
    %c0_i32 = arith.constant 0 : i32
    %c0_i32_0 = arith.constant 0 : i32
    %c0_i32_1 = arith.constant 0 : i32
    return %arg0, %c0_i32, %c0_i32_0 : i32, i32, i32
  }
}

</mosaic_0001>

<bundles_post_ra>
// kernel: tpu_custom_call.1
= control target key start
LH: loop header
LB: loop body
LE: loop exit
PB: predicated region body
PF: predicated region fallthrough
CT: control target
= control target key end

     0   :  { %6 = vsyncpa [#allocation3], 0  ;;  %s433_s0 = inlined_call_operand.vmem [shape: f32[16,1], index: 0, kind: input, shape index: {}]   ;;  %s434_s1 = inlined_call_operand.hbm [shape: f32[8,16,16], index: 1, kind: output, shape index: {}]  }
   0x1   :  { %8 = vsyncpa [#allocation3 + $0x1], 0  ;;  %s329_s6 = smov 0   ;;  %s331_s7 = smov 0  }
   0x2   :  { %s333_s8 = smov 0   ;;  %s335_s9 = smov 0  }
   0x3 LB: > { %s187_s10 = sadd.s32 4294967295, %s313_s9   ;;  %s188_s11 = sadd.s32 4294967294, %s313_s9   ;;  %s313_s9 = sphi %s335_s9, %s440_s9   ;;  %s309_s8 = sphi %s333_s8, %s439_s8   ;;  %s305_s7 = sphi %s331_s7, %s438_s7   ;;  %s301_s6 = sphi %s329_s6, %s437_s6  }
   0x4   : > { %s352_s12 = sadd.s32 1, %s313_s9   ;;  %s42_s13 = sadd.s32 1, %s309_s8 }
   0x5   : > { %s39_s14 = ssub.s32 %s313_s9, %s352_s12  ;;  %p52_p0 = scmp.ne.s32.totalorder %s309_s8, %s305_s7 }
   0x6   : > { %p40_p1 = scmp.eq.s32.totalorder %s39_s14, 0  ;;  %p53_p2 = scmp.eq.s32.totalorder %s187_s10, 7 }
   0x7   : > { %p58_p3 = scmp.ne.s32.totalorder %s305_s7, %s301_s6  ;;  %p59_p4 = scmp.eq.s32.totalorder %s188_s11, 7 }
   0x8   : > { %s364_s15 = scalar_select %p40_p1, %s309_s8, %s42_s13  }
   0x9   : > { %p366_p5 = por %p53_p2, %p52_p0  ;;  %p370_p6 = por %p59_p4, %p58_p3 }
   0xa   : > { %p190_p7 = scmp.ge.s32.totalorder %s313_s9, 1  ;;  %p80_p8 = scmp.lt.s32.totalorder %s313_s9, 9 }
   0xc   : > { %p81_p9 = pnand %p190_p7, %p80_p8 }
   0xd   : > { %v95_v0 = vld [vmem:[%s433_s0] sm:$0xff] (!%p81_p9)  ;;  %v96_v1 = vld [vmem:[%s433_s0 + $0x8] sm:$0xff] (!%p81_p9)  ;;  %v315_v2 = vmov (!%p81_p9), 0   ;;  %s92_s22 = sand.u32 (!%p81_p9), 1, %s305_s7   ;;  %vm121_vm0 = vcmask (!%p81_p9), 130048   ;;  %s199_s26 = sshll.u32 (!%p81_p9), %s187_s10, 8 }
   0xe   : > { %84 = sbr.rel (%p81_p9) target bundleno = 189 (0xbd), region = 24  ;;  %242 = vset.pattern.permute.xlu0 (!%p81_p9), %v315_v2  ;;  %v192_v3 = vmul.f32 (!%p81_p9), -5.0, %v95_v0  ;;  %v193_v4 = vmul.f32 (!%p81_p9), -5.0, %v96_v1  ;;  %s191_s23 = sshll.u32 (!%p81_p9), %s92_s22, 4 }
   0xf   : > { %s94_s24 = scalar_lea.vmem (!%p81_p9), [#allocation2], %s191_s23  ;;  %s390_s29 = scalar_lea.hbm (!%p81_p9), %s434_s1, %s199_s26 }
  0x10   : > { %v101_v5 = vmul.f32 (!%p81_p9), 1.442695, %v192_v3  ;;  %v103_v6 = vmul.f32 (!%p81_p9), 1.442695, %v193_v4  ;;  %s138_s25 = sshll.u32 (!%p81_p9), %s94_s24, 4  ;;  %s392_s30 = scalar_lea.sflag (!%p81_p9), [#allocation3], %s92_s22  ;;  %s385_s25 = int_to_ptr.vmem [resolvable:$true] %s138_s25 }
  0x11   : > { %s251_s2 = scalar_lea.vmem (!%p81_p9), %s385_s25, 256  ;;  %s316_s3 = smov (!%p81_p9), [#allocation2]  }
  0x12   : > { %243 = vpow2.f32 (!%p81_p9), %v101_v5  ;;  %p252_p10 = scmp.ne.s32.totalorder (!%p81_p9), %s385_s25, %s251_s2  ;;  %s255_s4 = sshll.u32 (!%p81_p9), %s316_s3, 4  ;;  %s256_s4 = int_to_ptr.vmem [resolvable:$false] %s255_s4 }
  0x13   : > { %245 = vpow2.f32 (!%p81_p9), %v103_v6  ;;  %s257_s5 = scalar_lea.vmem (!%p81_p9), %s256_s4, 512  ;;  %p258_p13 = scmp.lt.s32.totalorder (!%p81_p9), %s385_s25, %s256_s4 }
  0x14   : > { %p253_p11 = pnand (!%p81_p9), %p252_p10, %p366_p5  ;;  %p259_p0 = scmp.lt.s32.totalorder (!%p81_p9), %s257_s5, %s251_s2 }
  0x16   : > { %p254_p12 = pneg %p253_p11  ;;  %p260_p1 = por %p259_p0, %p258_p13 }
  0x18   : > { %p261_p2 = pnand %p260_p1, %p254_p12 }
  0x1c   : > { %v244_v7 = vpop.eup %243 }
  0x1d   : > { %v246_v8 = vpop.eup %245  ;;  %v105_v9 = vadd.f32 1.0, %v244_v7 }
  0x1e   : > { %v106_v10 = vadd.f32 1.0, %v246_v8 }
  0x1f   : > { %247 = vrcp.f32 %v105_v9 }
  0x20   : > { %249 = vrcp.f32 %v106_v10 }
  0x29   : > { %v248_v11 = vpop.eup %247 }
  0x2a   : > { %113 = vperm.xlu0 %242, %v248_v11   ;;  %v250_v12 = vpop.eup %249 }
  0x2e   : > { %118 = vperm.xlu0 %242, %v250_v12  }
  0xa9   : > { %v114_v13 = vpop.permute.xlu0 %113 }
  0xaa   : > { %122 = vst.msk [vmem:[%s94_s24] sm:$0xff] %vm121_vm0, %v114_v13 }
  0xad   : > { %v119_v14 = vpop.permute.xlu0 %118 }
  0xae   : > { %123 = vst.msk [vmem:[%s94_s24 + $0x8] sm:$0xff] %vm121_vm0, %v119_v14 }
  0xaf   : > { %264 = shalt.err (!%p261_p2)
}
  0xb0   : > { %s265_s10 = scalar_lea.hbm %s390_s29, 256  ;;  %s269_s14 = scalar_lea.hbm %s434_s1, 2048 }
  0xb1   : > { %p266_p3 = scmp.ne.s32.totalorder %s390_s29, %s265_s10  ;;  %p270_p8 = scmp.lt.u32.totalorder %s390_s29, %s434_s1 }
  0xb2   : > { %p271_p9 = scmp.lt.u32.totalorder %s269_s14, %s265_s10  ;;  %p273_p11 = scmp.lt.u32.totalorder %s265_s10, %s390_s29 }
  0xb3   : > { %p267_p4 = pnand %p266_p3, %p366_p5 }
  0xb4   : > { %p272_p10 = por %p271_p9, %p270_p8 }
  0xb5   : > { %p268_p7 = pneg %p267_p4 }
  0xb6   : > { %p274_p12 = por %p273_p11, %p272_p10 }
  0xb8   : > { %p275_p13 = pnand %p274_p12, %p268_p7 }
  0xba   : > { %278 = shalt.err (!%p275_p13)
}
  0xbb   : > { %s317_s20 = smov 128   ;;  %s318_s21 = smov 8  }
  0xbc   : > { %200 = dma.vmem_to_hbm [thread:$0]  (%p366_p5), %s385_s25, 256, %s390_s29, %s392_s30, %s317_s20, %s317_s20, %s318_s21  }
  0xbd PF: > { %p206_p0 = scmp.ge.s32.totalorder %s313_s9, 2  ;;  %s153_s22 = sand.u32 1, %s301_s6  }
  0xbe   : > { %s154_s23 = scalar_lea.sflag [#allocation3], %s153_s22 }
  0xbf   : > { %p203_p1 = pnand %p206_p0, %p370_p6 }
  0xc1   : > { %296 = dma.done.wait (!%p203_p1), %s154_s23, 256  }
  0xc2   : > { %298 = vsyncadd (!%p203_p1), %s154_s23, 4294967040  ;;  %p11_p2 = scmp.ge.s32.totalorder %s352_s12, 10   ;;  %s437_s6 = smov %s305_s7 }
  0xc3   : > { %s438_s7 = smov %s309_s8  ;;  %s439_s8 = smov %s364_s15 }
  0xc4   : > { %s440_s9 = smov %s352_s12  ;;  %13 = sbr.rel (!%p11_p2) target bundleno = 3 (0x3), region = 56 }
  0xcb   :  { %159 = vsyncpa [#allocation3], 1 }
  0xcc   :  { %161 = vsyncpa [#allocation3 + $0x1], 1 }

</bundles_post_ra>
